<compile_context>
chip_gen: v5e
topology: v5e:2x2
jax: 0.10.0
libtpu: 0.0.40
codegen_flags: <defaults>
</compile_context>

<pallas_src>
import jax
import jax.numpy as jnp
from jax.experimental import pallas as pl
from jax.experimental.pallas import tpu as pltpu

_LANE = 128
_SUBLANE = 8
_LANE_WIDTH = 512            # wide, lane-dense last dim (multiple of 128)


def _make_envelope_kernel(p, a, b, c):
    def envelope_kernel(x_ref, o_ref):
        x = x_ref[...]
        # 1/x on the EUP (approx) + two Newton-Raphson refinements -> f32-exact.
        r = pl.reciprocal(x, approx=True)
        r = r * (2.0 - x * r)
        r = r * (2.0 - x * r)
        # x^p via a short static multiply chain (p is a small static int).
        x_pow_p0 = x
        for _ in range(p - 1):
            x_pow_p0 = x_pow_p0 * x                   # x^p
        x_pow_p1 = x_pow_p0 * x                       # x^(p+1)
        env_val = (r
                   + a * x_pow_p0
                   + b * x_pow_p1
                   + c * x_pow_p1 * x)                # x^(p+2)
        o_ref[...] = jnp.where(x < 1.0, env_val, jnp.zeros_like(x))
    return envelope_kernel


def envelope(x, exponent, *, target_tile_bytes=1 << 20):
    """Applies the Envelope cutoff elementwise to an arbitrarily shaped array."""
    p = int(exponent)
    assert p >= 1, "Envelope exponent must be >= 1"
    a = -(p + 1) * (p + 2) / 2.0
    b = float(p * (p + 2))
    c = -p * (p + 1) / 2.0

    orig_shape = x.shape
    dtype = x.dtype
    flat = x.reshape(-1)
    n = flat.shape[0]
    itemsize = jnp.dtype(dtype).itemsize

    # Lane-dense 2-D layout: (rows, 512).
    rows = -(-n // _LANE_WIDTH)                       # cdiv

    # ~1 MiB tile; keep the row count (8,128)-aligned for tiled blocks.
    max_block_rows = max(_SUBLANE, target_tile_bytes // (_LANE_WIDTH * itemsize))
    max_block_rows -= max_block_rows % _SUBLANE

    if rows <= max_block_rows:
        block_rows = max(rows, 1)                     # block == full array -> no (8,128) constraint
        padded_rows = block_rows
    else:
        block_rows = max_block_rows
        padded_rows = -(-rows // block_rows) * block_rows

    padded_n = padded_rows * _LANE_WIDTH
    if padded_n != n:
        # Pad with 2.0 (>= 1): envelope(2.0) == 0 exactly, no 1/0 hazards.
        flat = jnp.concatenate(
            [flat, jnp.full((padded_n - n,), 2.0, dtype=dtype)])

    x2d = flat.reshape(padded_rows, _LANE_WIDTH)
    grid = (padded_rows // block_rows,)

    kernel = _make_envelope_kernel(p, a, b, c)
    out2d = pl.pallas_call(
        kernel,
        out_shape=jax.ShapeDtypeStruct((padded_rows, _LANE_WIDTH), dtype),
        grid=grid,
        in_specs=[pl.BlockSpec((block_rows, _LANE_WIDTH), lambda i: (i, 0))],
        out_specs=pl.BlockSpec((block_rows, _LANE_WIDTH), lambda i: (i, 0)),
        compiler_params=pltpu.CompilerParams(
            dimension_semantics=("parallel",),        # megacore sharding on v7x
        ),
    )(x2d)

    return out2d.reshape(-1)[:n].reshape(orig_shape)


def envelope_ref(x, exponent):
    """Pure-JAX reference mirroring the PyTorch forward exactly."""
    p = exponent
    a = -(p + 1) * (p + 2) / 2.0
    b = p * (p + 2) * 1.0
    c = -p * (p + 1) / 2.0
    x_pow_p0 = x ** p
    x_pow_p1 = x_pow_p0 * x
    env_val = 1.0 / x + a * x_pow_p0 + b * x_pow_p1 + c * x_pow_p1 * x
    return jnp.where(x < 1.0, env_val, jnp.zeros_like(x))


if __name__ == "__main__":
    exponent = 5  # deterministic "parameter" of the module (__init__ arg)

    key = jax.random.PRNGKey(0)
    k1, k2 = jax.random.split(key)

    # Distances in (0.05, 2.0): some below 1 (active), some above (zeroed).
    # Flat vector with a ragged length (exercises the padded-tail path) plus a
    # small 2-D input (exercises arbitrary-shape handling).
    x_flat = jax.random.uniform(k1, (1000,), dtype=jnp.float32,
                                minval=0.05, maxval=2.0)
    x_2d = jax.random.uniform(k2, (16, 128), dtype=jnp.float32,
                              minval=0.05, maxval=2.0)

    for x in (x_flat, x_2d):
        out = envelope(x, exponent)
        jax.block_until_ready(out)
        ref = envelope_ref(x, exponent)
        assert out.shape == ref.shape and out.dtype == ref.dtype
        assert jnp.allclose(out, ref, rtol=1e-5, atol=1e-5), "mismatch vs reference"

    print("KERNEL_OK")
</pallas_src>

<mosaic_0001>
module attributes {stable_mosaic.version = 11 : i64} {
  func.func @envelope_kernel(%arg0: i32, %arg1: memref<2x512xf32, #tpu.memory_space<vmem>>, %arg2: memref<2x512xf32, #tpu.memory_space<vmem>>) attributes {dimension_semantics = [#tpu.dimension_semantics<parallel>], iteration_bounds = array<i64: 1>, scalar_prefetch = 0 : i64, scratch_operands = 0 : i64, tpu.core_type = #tpu.core_type<tc>, window_params = [{transform_indices = @transform_0, window_bounds = array<i64: 2, 512>}, {transform_indices = @transform_1, window_bounds = array<i64: 2, 512>}]} {
    %c0 = arith.constant 0 : index
    %c0_0 = arith.constant 0 : index
    %0 = vector.load %arg1[%c0, %c0_0] : memref<2x512xf32, #tpu.memory_space<vmem>>, vector<2x512xf32>
    %1 = tpu.reciprocal %0 {approx = true} : vector<2x512xf32> -> vector<2x512xf32>
    %2 = arith.mulf %0, %1 : vector<2x512xf32>
    %cst = arith.constant 2.000000e+00 : f32
    %3 = vector.broadcast %cst : f32 to vector<2x512xf32>
    %4 = arith.subf %3, %2 : vector<2x512xf32>
    %5 = arith.mulf %1, %4 : vector<2x512xf32>
    %6 = arith.mulf %0, %5 : vector<2x512xf32>
    %cst_1 = arith.constant 2.000000e+00 : f32
    %7 = vector.broadcast %cst_1 : f32 to vector<2x512xf32>
    %8 = arith.subf %7, %6 : vector<2x512xf32>
    %9 = arith.mulf %5, %8 : vector<2x512xf32>
    %10 = arith.mulf %0, %0 : vector<2x512xf32>
    %11 = arith.mulf %10, %0 : vector<2x512xf32>
    %12 = arith.mulf %11, %0 : vector<2x512xf32>
    %13 = arith.mulf %12, %0 : vector<2x512xf32>
    %14 = arith.mulf %13, %0 : vector<2x512xf32>
    %cst_2 = arith.constant -2.100000e+01 : f32
    %15 = vector.broadcast %cst_2 : f32 to vector<2x512xf32>
    %16 = arith.mulf %15, %13 : vector<2x512xf32>
    %17 = arith.addf %9, %16 : vector<2x512xf32>
    %cst_3 = arith.constant 3.500000e+01 : f32
    %18 = vector.broadcast %cst_3 : f32 to vector<2x512xf32>
    %19 = arith.mulf %18, %14 : vector<2x512xf32>
    %20 = arith.addf %17, %19 : vector<2x512xf32>
    %cst_4 = arith.constant -1.500000e+01 : f32
    %21 = vector.broadcast %cst_4 : f32 to vector<2x512xf32>
    %22 = arith.mulf %21, %14 : vector<2x512xf32>
    %23 = arith.mulf %22, %0 : vector<2x512xf32>
    %24 = arith.addf %20, %23 : vector<2x512xf32>
    %cst_5 = arith.constant 1.000000e+00 : f32
    %25 = vector.broadcast %cst_5 : f32 to vector<2x512xf32>
    %26 = arith.cmpf olt, %0, %25 : vector<2x512xf32>
    %cst_6 = arith.constant 0.000000e+00 : f32
    %27 = vector.broadcast %cst_6 : f32 to vector<2x512xf32>
    %28 = arith.select %26, %24, %27 : vector<2x512xi1>, vector<2x512xf32>
    %c0_7 = arith.constant 0 : index
    %c0_8 = arith.constant 0 : index
    %29 = vector.load %arg2[%c0_7, %c0_8] : memref<2x512xf32, #tpu.memory_space<vmem>>, vector<2x512xf32>
    tpu.vector_store %arg2[%c0_7, %c0_8], %28 {strides = array<i32>} : memref<2x512xf32, #tpu.memory_space<vmem>>, vector<2x512xf32>,
    return
  }
  func.func @transform_0(%arg0: i32) -> (i32, i32) {
    %c0_i32 = arith.constant 0 : i32
    %c0_i32_0 = arith.constant 0 : i32
    return %arg0, %c0_i32 : i32, i32
  }
  func.func @transform_1(%arg0: i32) -> (i32, i32) {
    %c0_i32 = arith.constant 0 : i32
    %c0_i32_0 = arith.constant 0 : i32
    return %arg0, %c0_i32 : i32, i32
  }
}

</mosaic_0001>

<bundles_post_ra>
// kernel: tpu_custom_call.1
= control target key start
LH: loop header
LB: loop body
LE: loop exit
PB: predicated region body
PF: predicated region fallthrough
CT: control target
= control target key end

     0   :  { %6 = vsyncpa [#allocation3], 0  ;;  %s137_s0 = inlined_call_operand.hbm [shape: f32[2,512], index: 0, kind: input, shape index: {}]   ;;  %s138_s1 = inlined_call_operand.hbm [shape: f32[2,512], index: 1, kind: output, shape index: {}]  }
   0x1   :  { %7 = vsyncpa [#allocation4], 0  ;;  %s13_s8 = sshll.u32 %s137_s0, 4  ;;  %s119_s9 = smov [#allocation2]   ;;  %s14_s8 = int_to_ptr.hbm [resolvable:$true] %s13_s8 }
   0x2   :  { %s15_s10 = sshll.u32 %s119_s9, 4  ;;  %s16_s10 = int_to_ptr.vmem [resolvable:$true] %s15_s10 }
   0x3   :  { %18 = dma.hbm_to_vmem [thread:$0]  %s14_s8, 128, %s16_s10, [#allocation3]  }
   0x4   :  { %115 = dma.done.wait [#allocation3], 128  }
   0x5   :  { %116 = vsyncadd [#allocation3], 4294967168  ;;  %v23_v0 = vld [vmem:[#allocation2] sm:$0xff]  ;;  %s120_s0 = smov [#allocation5]   ;;  %s53_s14 = sshll.u32 %s138_s1, 4  ;;  %s54_s14 = int_to_ptr.hbm [resolvable:$true] %s53_s14 }
   0x6   :  { %65 = vrcp.f32 %v23_v0  ;;  %v31_v1 = vmul.f32 %v23_v0, %v23_v0  ;;  %s51_s11 = sshll.u32 %s120_s0, 4  ;;  %vm43_vm0 = vcmp.lt.f32.partialorder %v23_v0, 1.0  ;;  %s52_s11 = int_to_ptr.vmem [resolvable:$true] %s51_s11 }
   0x8   :  { %v32_v2 = vmul.f32 %v31_v1, %v23_v0 }
   0xa   :  { %v33_v3 = vmul.f32 %v32_v2, %v23_v0 }
   0xc   :  { %v66_v4 = vpop.eup %65  ;;  %v34_v6 = vmul.f32 %v33_v3, %v23_v0 }
   0xd   :  { %v25_v5 = vmul.f32 %v66_v4, %v23_v0 }
   0xe   :  { %v35_v9 = vmul.f32 %v34_v6, %v23_v0  ;;  %v36_v12 = vmul.f32 -21.0, %v34_v6 }
   0xf   :  { %v26_v7 = vsub.f32 2.0, %v25_v5 }
  0x10   :  { %v40_v13 = vmul.f32 -15.0, %v35_v9  ;;  %v38_v15 = vmul.f32 35.0, %v35_v9 }
  0x11   :  { %v27_v8 = vmul.f32 %v66_v4, %v26_v7 }
  0x12   :  { %v41_v17 = vmul.f32 %v40_v13, %v23_v0 }
  0x13   :  { %v28_v10 = vmul.f32 %v27_v8, %v23_v0 }
  0x15   :  { %v29_v11 = vsub.f32 2.0, %v28_v10 }
  0x17   :  { %v30_v14 = vmul.f32 %v29_v11, %v27_v8 }
  0x19   :  { %v37_v16 = vadd.f32 %v36_v12, %v30_v14 }
  0x1b   :  { %v39_v18 = vadd.f32 %v38_v15, %v37_v16 }
  0x1d   :  { %v42_v19 = vadd.f32 %v41_v17, %v39_v18 }
  0x1f   :  { %v44_v20 = vsel %vm43_vm0, %v42_v19, 0.0 }
  0x20   :  { %45 = vst [vmem:[#allocation5] sm:$0xff] %v44_v20 }
  0x21   :  { %56 = dma.vmem_to_hbm [thread:$0]  %s52_s11, 128, %s54_s14, [#allocation4]  }
  0x22   :  { %117 = dma.done.wait [#allocation4], 128  }
  0x23   :  { %118 = vsyncadd [#allocation4], 4294967168 }
  0x24   :  { %61 = vsyncpa [#allocation3], 1 }
  0x25   :  { %62 = vsyncpa [#allocation4], 1 }

</bundles_post_ra>
